<compile_context>
chip_gen: v5e
topology: v5e:2x2
jax: 0.10.0
libtpu: 0.0.40
codegen_flags: <defaults>
</compile_context>

<pallas_src>
import math

import jax
import jax.numpy as jnp
from jax.experimental import pallas as pl
from jax.experimental.pallas import tpu as pltpu

_HAS_BUFFERED = hasattr(pl, "Buffered")


# ----------------------------------------------------------------------------- kernel
def _critic_kernel(x_ref, w1_ref, b1_ref, w2_ref, b2_ref, w3_ref, b3_ref, out_ref):
    """Fused forward pass: two bf16 MXU matmuls (+f32 acc, ReLU), head as a VPU reduce."""
    # state tile stays f32 through the DMA; bf16 cast happens here (free under the MXU).
    x = x_ref[...].astype(jnp.bfloat16)                                   # [bm, S]
    h1 = jnp.dot(x, w1_ref[...], preferred_element_type=jnp.float32) + b1_ref[...]
    h1 = jnp.maximum(h1, 0.0)                                             # ReLU (VPU)
    h2 = jnp.dot(h1.astype(jnp.bfloat16), w2_ref[...],
                 preferred_element_type=jnp.float32) + b2_ref[...]
    h2 = jnp.maximum(h2, 0.0)                                             # ReLU (VPU)
    # value head (out_features == 1): VPU multiply + lane reduction instead of an N=1
    # MXU matmul; w3_ref is the [1, H] f32 row, b3 is a scalar living in SMEM.
    v = jnp.sum(h2 * w3_ref[...], axis=-1, keepdims=True) + b3_ref[0, 0]
    out_ref[...] = v.astype(out_ref.dtype)                                # [bm, 1]


# ----------------------------------------------------------------------------- helpers
def _round_up(x, m):
    return ((x + m - 1) // m) * m


def _vmem_capacity_bytes():
    """Per-core VMEM capacity; conservative fallback (v7x = 64 MiB/TC) if unqueryable."""
    try:
        info = pltpu.get_tpu_info()
        cap = getattr(info, "vmem_capacity_bytes", None)
        if cap:
            return int(cap)
    except Exception:
        pass
    return 64 << 20


def _vmem_estimate(block_b, S, H, weight_buffers, io_buffers=2):
    """Rough VMEM residency: weights + pipelined I/O tiles + activation intermediates."""
    weight_bytes = (S * H + H * H) * 2 + (3 * H) * 4            # bf16 w1/w2, f32 b1/b2/w3 row
    io_bytes = block_b * (S * 4 + 1 * 4)                        # f32 state tile + f32 out tile
    act_bytes = block_b * H * (4 + 2 + 4 + 4)                   # h1 f32, h1 bf16, h2 f32, h2*w3
    return weight_buffers * weight_bytes + io_buffers * io_bytes + act_bytes + (1 << 20)


def _choose_block_b(B, S):
    """Single tile unless the batch is big enough to pipeline the state DMA / shard v7x TCs.

    Splitting a small batch is pure ~0.35us/step overhead on single-TC v5e/v6e and doubles
    the (dominant) weight DMA on v7x, so grid=(1,) is the default at these sizes.
    """
    if B < 2048 and B * S * 4 < (512 << 10):
        return B
    return max(128, min(1024, _round_up(pl.cdiv(B, 2), 128)))


def _const_spec(shape, single_buffer):
    """Weight/bias block whose block index never changes: single-buffer it when possible."""
    if single_buffer and _HAS_BUFFERED:
        try:
            return pl.BlockSpec(shape, lambda i: (0, 0), pipeline_mode=pl.Buffered(1))
        except TypeError:
            pass
    return pl.BlockSpec(shape, lambda i: (0, 0))


# ----------------------------------------------------------------------------- wrapper
def critic_forward(state, params, *, block_b=None):
    """Runs the fused Critic forward pass as a single Pallas call.

    state:  [B, state_dim] float32
    params: prepared dict (see prepare_critic_params): w1 [S,Hp] bf16, b1 [1,Hp] f32,
            w2 [Hp,Hp] bf16, b2 [1,Hp] f32, w3_row [1,Hp] f32, b3 [1,1] f32.
    """
    B, S = state.shape
    H = params["w1"].shape[1]

    weight_buffers = 1 if _HAS_BUFFERED else 2
    budget = max(_vmem_capacity_bytes() - (8 << 20), 16 << 20)

    if block_b is None:
        block_b = _choose_block_b(B, S)
    # Shrink the batch tile until weights + activations + pipelined I/O fit the VMEM budget.
    while block_b > 16 and _vmem_estimate(block_b, S, H, weight_buffers) > budget:
        nb = block_b // 2
        block_b = _round_up(nb, 128) if nb >= 128 else max(16, _round_up(nb, 16))
    block_b = min(block_b, B)

    grid = (pl.cdiv(B, block_b),)
    need = _vmem_estimate(block_b, S, H, weight_buffers)
    vmem_limit = int(min(max(need, 16 << 20), budget))

    def _build_and_call(single_buffer_weights):
        cs = lambda shape: _const_spec(shape, single_buffer_weights)
        return pl.pallas_call(
            _critic_kernel,
            out_shape=jax.ShapeDtypeStruct((B, 1), jnp.float32),
            grid_spec=pltpu.PrefetchScalarGridSpec(
                num_scalar_prefetch=0,
                grid=grid,
                in_specs=[
                    pl.BlockSpec((block_b, S), lambda i: (i, 0)),      # state tile (f32)
                    cs((S, H)),                                        # w1 (bf16)
                    cs((1, H)),                                        # b1 (f32)
                    cs((H, H)),                                        # w2 (bf16)
                    cs((1, H)),                                        # b2 (f32)
                    cs((1, H)),                                        # w3 row (f32)
                    pl.BlockSpec(memory_space=pltpu.MemorySpace.SMEM), # b3 scalar in SMEM
                ],
                out_specs=pl.BlockSpec((block_b, 1), lambda i: (i, 0)),
            ),
            compiler_params=pltpu.CompilerParams(
                dimension_semantics=("parallel",),
                vmem_limit_bytes=vmem_limit,
            ),
        )(state, params["w1"], params["b1"], params["w2"], params["b2"],
          params["w3_row"], params["b3"])

    if _HAS_BUFFERED:
        try:
            return _build_and_call(True)
        except Exception:
            return _build_and_call(False)
    return _build_and_call(False)


# ----------------------------------------------------------------------------- params
def init_critic_params(key, state_dim, hidden_size):
    """Deterministic f32 init mimicking PyTorch nn.Linear default (U[-1/sqrt(fan_in), +])."""
    keys = jax.random.split(key, 6)

    def linear(kw, kb, fan_in, fan_out):
        bound = 1.0 / math.sqrt(fan_in)
        w = jax.random.uniform(kw, (fan_in, fan_out), jnp.float32, -bound, bound)
        b = jax.random.uniform(kb, (1, fan_out), jnp.float32, -bound, bound)
        return w, b

    w1, b1 = linear(keys[0], keys[1], state_dim, hidden_size)
    w2, b2 = linear(keys[2], keys[3], hidden_size, hidden_size)
    w3, b3 = linear(keys[4], keys[5], hidden_size, 1)
    return {"w1": w1, "b1": b1, "w2": w2, "b2": b2, "w3": w3, "b3": b3}


def _pad_axis(a, axis, target):
    pad = target - a.shape[axis]
    if pad <= 0:
        return a
    widths = [(0, 0)] * a.ndim
    widths[axis] = (0, pad)
    return jnp.pad(a, widths)


def prepare_critic_params(raw, *, lane_multiple=128):
    """One-time conversion for the kernel: bf16 MXU weights, [1,H] w3 row, SMEM b3 scalar,
    and zero-padding of the hidden dim to a lane multiple (exact zeros -> same math)."""
    S, H = raw["w1"].shape
    Hp = _round_up(H, lane_multiple)
    w1 = _pad_axis(raw["w1"], 1, Hp).astype(jnp.bfloat16)
    b1 = _pad_axis(raw["b1"].reshape(1, H), 1, Hp).astype(jnp.float32)
    w2 = _pad_axis(_pad_axis(raw["w2"], 0, Hp), 1, Hp).astype(jnp.bfloat16)
    b2 = _pad_axis(raw["b2"].reshape(1, H), 1, Hp).astype(jnp.float32)
    w3 = _pad_axis(raw["w3"].reshape(1, H), 1, Hp).astype(jnp.float32)
    b3 = raw["b3"].reshape(1, 1).astype(jnp.float32)
    return {"w1": w1, "b1": b1, "w2": w2, "b2": b2, "w3_row": w3, "b3": b3}


# ----------------------------------------------------------------------------- reference
def critic_reference(state, raw):
    """Pure-JAX reference with the same bf16 weight/activation quantization as the kernel."""
    xb = state.astype(jnp.bfloat16)
    w1b = raw["w1"].astype(jnp.bfloat16)
    w2b = raw["w2"].astype(jnp.bfloat16)
    h1 = jnp.maximum(
        jnp.dot(xb, w1b, preferred_element_type=jnp.float32) + raw["b1"], 0.0)
    h2 = jnp.maximum(
        jnp.dot(h1.astype(jnp.bfloat16), w2b, preferred_element_type=jnp.float32)
        + raw["b2"], 0.0)
    return h2 @ raw["w3"] + raw["b3"]


if __name__ == "__main__":
    # Small shapes consistent with the module: batch=8 states of dim 16, hidden=32.
    batch, state_dim, hidden = 8, 16, 32

    key = jax.random.PRNGKey(0)
    k_params, k_state = jax.random.split(key)
    raw_params = init_critic_params(k_params, state_dim, hidden)
    kernel_params = prepare_critic_params(raw_params)     # one-time bf16 cast + lane padding
    state = jax.random.normal(k_state, (batch, state_dim), jnp.float32)

    value = critic_forward(state, kernel_params)
    value = jax.block_until_ready(value)

    ref = critic_reference(state, raw_params)
    assert value.shape == (batch, 1)
    assert jnp.allclose(value, ref, atol=1e-3, rtol=1e-3), "mismatch vs reference"

    print("KERNEL_OK")
</pallas_src>

<mosaic_0001>
module attributes {stable_mosaic.version = 11 : i64} {
  func.func @_critic_kernel(%arg0: i32, %arg1: memref<8x16xf32, #tpu.memory_space<vmem>>, %arg2: memref<16x128xbf16, #tpu.memory_space<vmem>>, %arg3: memref<1x128xf32, #tpu.memory_space<vmem>>, %arg4: memref<128x128xbf16, #tpu.memory_space<vmem>>, %arg5: memref<1x128xf32, #tpu.memory_space<vmem>>, %arg6: memref<1x128xf32, #tpu.memory_space<vmem>>, %arg7: memref<1x1xf32, #tpu.memory_space<smem>>, %arg8: memref<8x1xf32, #tpu.memory_space<vmem>>) attributes {dimension_semantics = [#tpu.dimension_semantics<parallel>], iteration_bounds = array<i64: 1>, scalar_prefetch = 0 : i64, scratch_operands = 0 : i64, tpu.core_type = #tpu.core_type<tc>, window_params = [{transform_indices = @transform_0, window_bounds = array<i64: 8, 16>}, {pipeline_mode = #tpu.pipeline_mode<synchronous>, transform_indices = @transform_1, window_bounds = array<i64: 16, 128>}, {pipeline_mode = #tpu.pipeline_mode<synchronous>, transform_indices = @transform_2, window_bounds = array<i64: 1, 128>}, {pipeline_mode = #tpu.pipeline_mode<synchronous>, transform_indices = @transform_3, window_bounds = array<i64: 128, 128>}, {pipeline_mode = #tpu.pipeline_mode<synchronous>, transform_indices = @transform_4, window_bounds = array<i64: 1, 128>}, {pipeline_mode = #tpu.pipeline_mode<synchronous>, transform_indices = @transform_5, window_bounds = array<i64: 1, 128>}, {transform_indices = @transform_6, window_bounds = array<i64: 1, 1>}, {transform_indices = @transform_7, window_bounds = array<i64: 8, 1>}]} {
    %c0 = arith.constant 0 : index
    %c0_0 = arith.constant 0 : index
    %0 = vector.load %arg1[%c0, %c0_0] : memref<8x16xf32, #tpu.memory_space<vmem>>, vector<8x16xf32>
    %1 = arith.truncf %0 : vector<8x16xf32> to vector<8x16xbf16>
    %c0_1 = arith.constant 0 : index
    %c0_2 = arith.constant 0 : index
    %2 = vector.load %arg2[%c0_1, %c0_2] : memref<16x128xbf16, #tpu.memory_space<vmem>>, vector<16x128xbf16>
    %cst = arith.constant dense<0.000000e+00> : vector<8x128xf32>
    %3 = tpu.matmul %1, %2, %cst {dimension_numbers = #tpu.dot_dimension_numbers<[1], [0], [0], [1], [0, 0, 1, 1], [], []>} : vector<8x16xbf16>, vector<16x128xbf16>, vector<8x128xf32> -> vector<8x128xf32>
    %c0_3 = arith.constant 0 : index
    %c0_4 = arith.constant 0 : index
    %4 = vector.load %arg3[%c0_3, %c0_4] : memref<1x128xf32, #tpu.memory_space<vmem>>, vector<1x128xf32>
    %5 = vector.broadcast %4 : vector<1x128xf32> to vector<8x128xf32>
    %6 = arith.addf %3, %5 : vector<8x128xf32>
    %cst_5 = arith.constant 0.000000e+00 : f32
    %7 = vector.broadcast %cst_5 : f32 to vector<8x128xf32>
    %8 = arith.maximumf %6, %7 : vector<8x128xf32>
    %9 = arith.truncf %8 : vector<8x128xf32> to vector<8x128xbf16>
    %c0_6 = arith.constant 0 : index
    %c0_7 = arith.constant 0 : index
    %10 = vector.load %arg4[%c0_6, %c0_7] : memref<128x128xbf16, #tpu.memory_space<vmem>>, vector<128x128xbf16>
    %cst_8 = arith.constant dense<0.000000e+00> : vector<8x128xf32>
    %11 = tpu.matmul %9, %10, %cst_8 {dimension_numbers = #tpu.dot_dimension_numbers<[1], [0], [0], [1], [0, 0, 1, 1], [], []>} : vector<8x128xbf16>, vector<128x128xbf16>, vector<8x128xf32> -> vector<8x128xf32>
    %c0_9 = arith.constant 0 : index
    %c0_10 = arith.constant 0 : index
    %12 = vector.load %arg5[%c0_9, %c0_10] : memref<1x128xf32, #tpu.memory_space<vmem>>, vector<1x128xf32>
    %13 = vector.broadcast %12 : vector<1x128xf32> to vector<8x128xf32>
    %14 = arith.addf %11, %13 : vector<8x128xf32>
    %cst_11 = arith.constant 0.000000e+00 : f32
    %15 = vector.broadcast %cst_11 : f32 to vector<8x128xf32>
    %16 = arith.maximumf %14, %15 : vector<8x128xf32>
    %c0_12 = arith.constant 0 : index
    %c0_13 = arith.constant 0 : index
    %17 = vector.load %arg6[%c0_12, %c0_13] : memref<1x128xf32, #tpu.memory_space<vmem>>, vector<1x128xf32>
    %18 = vector.broadcast %17 : vector<1x128xf32> to vector<8x128xf32>
    %19 = arith.mulf %16, %18 : vector<8x128xf32>
    %cst_14 = arith.constant dense<0.000000e+00> : vector<8xf32>
    %20 = vector.multi_reduction <add>, %19, %cst_14 [1] : vector<8x128xf32> to vector<8xf32>
    %21 = vector.shape_cast %20 : vector<8xf32> to vector<8x1xf32>
    %c0_15 = arith.constant 0 : index
    %c0_16 = arith.constant 0 : index
    %22 = memref.load %arg7[%c0_15, %c0_16] : memref<1x1xf32, #tpu.memory_space<smem>>
    %23 = vector.broadcast %22 : f32 to vector<8x1xf32>
    %24 = arith.addf %21, %23 : vector<8x1xf32>
    %c0_17 = arith.constant 0 : index
    %c0_18 = arith.constant 0 : index
    %25 = vector.load %arg8[%c0_17, %c0_18] : memref<8x1xf32, #tpu.memory_space<vmem>>, vector<8x1xf32>
    tpu.vector_store %arg8[%c0_17, %c0_18], %24 {strides = array<i32>} : memref<8x1xf32, #tpu.memory_space<vmem>>, vector<8x1xf32>,
    return
  }
  func.func @transform_0(%arg0: i32) -> (i32, i32) {
    %c0_i32 = arith.constant 0 : i32
    %c0_i32_0 = arith.constant 0 : i32
    return %arg0, %c0_i32 : i32, i32
  }
  func.func @transform_1(%arg0: i32) -> (i32, i32) {
    %c0_i32 = arith.constant 0 : i32
    %c0_i32_0 = arith.constant 0 : i32
    %c0_i32_1 = arith.constant 0 : i32
    return %c0_i32, %c0_i32_0 : i32, i32
  }
  func.func @transform_2(%arg0: i32) -> (i32, i32) {
    %c0_i32 = arith.constant 0 : i32
    %c0_i32_0 = arith.constant 0 : i32
    %c0_i32_1 = arith.constant 0 : i32
    return %c0_i32, %c0_i32_0 : i32, i32
  }
  func.func @transform_3(%arg0: i32) -> (i32, i32) {
    %c0_i32 = arith.constant 0 : i32
    %c0_i32_0 = arith.constant 0 : i32
    %c0_i32_1 = arith.constant 0 : i32
    return %c0_i32, %c0_i32_0 : i32, i32
  }
  func.func @transform_4(%arg0: i32) -> (i32, i32) {
    %c0_i32 = arith.constant 0 : i32
    %c0_i32_0 = arith.constant 0 : i32
    %c0_i32_1 = arith.constant 0 : i32
    return %c0_i32, %c0_i32_0 : i32, i32
  }
  func.func @transform_5(%arg0: i32) -> (i32, i32) {
    %c0_i32 = arith.constant 0 : i32
    %c0_i32_0 = arith.constant 0 : i32
    %c0_i32_1 = arith.constant 0 : i32
    return %c0_i32, %c0_i32_0 : i32, i32
  }
  func.func @transform_6(%arg0: i32) -> (i32, i32) {
    %c0_i32 = arith.constant 0 : i32
    %c0_i32_0 = arith.constant 0 : i32
    %c0_i32_1 = arith.constant 0 : i32
    return %c0_i32, %c0_i32_0 : i32, i32
  }
  func.func @transform_7(%arg0: i32) -> (i32, i32) {
    %c0_i32 = arith.constant 0 : i32
    %c0_i32_0 = arith.constant 0 : i32
    return %arg0, %c0_i32 : i32, i32
  }
}

module attributes {stable_mosaic.version = 11 : i64} {
  func.func @_critic_kernel(%arg0: i32, %arg1: memref<8x16xf32, #tpu.memory_space<vmem>>, %arg2: memref<16x128xbf16, #tpu.memory_space<vmem>>, %arg3: memref<1x128xf32, #tpu.memory_space<vmem>>, %arg4: memref<128x128xbf16, #tpu.memory_space<vmem>>, %arg5: memref<1x128xf32, #tpu.memory_space<vmem>>, %arg6: memref<1x128xf32, #tpu.memory_space<vmem>>, %arg7: memref<1x1xf32, #tpu.memory_space<smem>>, %arg8: memref<8x1xf32, #tpu.memory_space<vmem>>) attributes {dimension_semantics = [#tpu.dimension_semantics<parallel>], iteration_bounds = array<i64: 1>, scalar_prefetch = 0 : i64, scratch_operands = 0 : i64, tpu.core_type = #tpu.core_type<tc>, window_params = [{transform_indices = @transform_0, window_bounds = array<i64: 8, 16>}, {pipeline_mode = #tpu.pipeline_mode<synchronous>, transform_indices = @transform_1, window_bounds = array<i64: 16, 128>}, {pipeline_mode = #tpu.pipeline_mode<synchronous>, transform_indices = @transform_2, window_bounds = array<i64: 1, 128>}, {pipeline_mode = #tpu.pipeline_mode<synchronous>, transform_indices = @transform_3, window_bounds = array<i64: 128, 128>}, {pipeline_mode = #tpu.pipeline_mode<synchronous>, transform_indices = @transform_4, window_bounds = array<i64: 1, 128>}, {pipeline_mode = #tpu.pipeline_mode<synchronous>, transform_indices = @transform_5, window_bounds = array<i64: 1, 128>}, {transform_indices = @transform_6, window_bounds = array<i64: 1, 1>}, {transform_indices = @transform_7, window_bounds = array<i64: 8, 1>}]} {
    %c0 = arith.constant 0 : index
    %c0_0 = arith.constant 0 : index
    %0 = vector.load %arg1[%c0, %c0_0] : memref<8x16xf32, #tpu.memory_space<vmem>>, vector<8x16xf32>
    %1 = arith.truncf %0 : vector<8x16xf32> to vector<8x16xbf16>
    %c0_1 = arith.constant 0 : index
    %c0_2 = arith.constant 0 : index
    %2 = vector.load %arg2[%c0_1, %c0_2] : memref<16x128xbf16, #tpu.memory_space<vmem>>, vector<16x128xbf16>
    %cst = arith.constant dense<0.000000e+00> : vector<8x128xf32>
    %3 = tpu.matmul %1, %2, %cst {dimension_numbers = #tpu.dot_dimension_numbers<[1], [0], [0], [1], [0, 0, 1, 1], [], []>} : vector<8x16xbf16>, vector<16x128xbf16>, vector<8x128xf32> -> vector<8x128xf32>
    %c0_3 = arith.constant 0 : index
    %c0_4 = arith.constant 0 : index
    %4 = vector.load %arg3[%c0_3, %c0_4] : memref<1x128xf32, #tpu.memory_space<vmem>>, vector<1x128xf32>
    %5 = vector.broadcast %4 : vector<1x128xf32> to vector<8x128xf32>
    %6 = arith.addf %3, %5 : vector<8x128xf32>
    %cst_5 = arith.constant 0.000000e+00 : f32
    %7 = vector.broadcast %cst_5 : f32 to vector<8x128xf32>
    %8 = arith.maximumf %6, %7 : vector<8x128xf32>
    %9 = arith.truncf %8 : vector<8x128xf32> to vector<8x128xbf16>
    %c0_6 = arith.constant 0 : index
    %c0_7 = arith.constant 0 : index
    %10 = vector.load %arg4[%c0_6, %c0_7] : memref<128x128xbf16, #tpu.memory_space<vmem>>, vector<128x128xbf16>
    %cst_8 = arith.constant dense<0.000000e+00> : vector<8x128xf32>
    %11 = tpu.matmul %9, %10, %cst_8 {dimension_numbers = #tpu.dot_dimension_numbers<[1], [0], [0], [1], [0, 0, 1, 1], [], []>} : vector<8x128xbf16>, vector<128x128xbf16>, vector<8x128xf32> -> vector<8x128xf32>
    %c0_9 = arith.constant 0 : index
    %c0_10 = arith.constant 0 : index
    %12 = vector.load %arg5[%c0_9, %c0_10] : memref<1x128xf32, #tpu.memory_space<vmem>>, vector<1x128xf32>
    %13 = vector.broadcast %12 : vector<1x128xf32> to vector<8x128xf32>
    %14 = arith.addf %11, %13 : vector<8x128xf32>
    %cst_11 = arith.constant 0.000000e+00 : f32
    %15 = vector.broadcast %cst_11 : f32 to vector<8x128xf32>
    %16 = arith.maximumf %14, %15 : vector<8x128xf32>
    %c0_12 = arith.constant 0 : index
    %c0_13 = arith.constant 0 : index
    %17 = vector.load %arg6[%c0_12, %c0_13] : memref<1x128xf32, #tpu.memory_space<vmem>>, vector<1x128xf32>
    %18 = vector.broadcast %17 : vector<1x128xf32> to vector<8x128xf32>
    %19 = arith.mulf %16, %18 : vector<8x128xf32>
    %cst_14 = arith.constant dense<0.000000e+00> : vector<8xf32>
    %20 = vector.multi_reduction <add>, %19, %cst_14 [1] : vector<8x128xf32> to vector<8xf32>
    %21 = vector.shape_cast %20 : vector<8xf32> to vector<8x1xf32>
    %c0_15 = arith.constant 0 : index
    %c0_16 = arith.constant 0 : index
    %22 = memref.load %arg7[%c0_15, %c0_16] : memref<1x1xf32, #tpu.memory_space<smem>>
    %23 = vector.broadcast %22 : f32 to vector<8x1xf32>
    %24 = arith.addf %21, %23 : vector<8x1xf32>
    %c0_17 = arith.constant 0 : index
    %c0_18 = arith.constant 0 : index
    %25 = vector.load %arg8[%c0_17, %c0_18] : memref<8x1xf32, #tpu.memory_space<vmem>>, vector<8x1xf32>
    tpu.vector_store %arg8[%c0_17, %c0_18], %24 {strides = array<i32>} : memref<8x1xf32, #tpu.memory_space<vmem>>, vector<8x1xf32>,
    return
  }
  func.func @transform_0(%arg0: i32) -> (i32, i32) {
    %c0_i32 = arith.constant 0 : i32
    %c0_i32_0 = arith.constant 0 : i32
    return %arg0, %c0_i32 : i32, i32
  }
  func.func @transform_1(%arg0: i32) -> (i32, i32) {
    %c0_i32 = arith.constant 0 : i32
    %c0_i32_0 = arith.constant 0 : i32
    %c0_i32_1 = arith.constant 0 : i32
    return %c0_i32, %c0_i32_0 : i32, i32
  }
  func.func @transform_2(%arg0: i32) -> (i32, i32) {
    %c0_i32 = arith.constant 0 : i32
    %c0_i32_0 = arith.constant 0 : i32
    %c0_i32_1 = arith.constant 0 : i32
    return %c0_i32, %c0_i32_0 : i32, i32
  }
  func.func @transform_3(%arg0: i32) -> (i32, i32) {
    %c0_i32 = arith.constant 0 : i32
    %c0_i32_0 = arith.constant 0 : i32
    %c0_i32_1 = arith.constant 0 : i32
    return %c0_i32, %c0_i32_0 : i32, i32
  }
  func.func @transform_4(%arg0: i32) -> (i32, i32) {
    %c0_i32 = arith.constant 0 : i32
    %c0_i32_0 = arith.constant 0 : i32
    %c0_i32_1 = arith.constant 0 : i32
    return %c0_i32, %c0_i32_0 : i32, i32
  }
  func.func @transform_5(%arg0: i32) -> (i32, i32) {
    %c0_i32 = arith.constant 0 : i32
    %c0_i32_0 = arith.constant 0 : i32
    %c0_i32_1 = arith.constant 0 : i32
    return %c0_i32, %c0_i32_0 : i32, i32
  }
  func.func @transform_6(%arg0: i32) -> (i32, i32) {
    %c0_i32 = arith.constant 0 : i32
    %c0_i32_0 = arith.constant 0 : i32
    %c0_i32_1 = arith.constant 0 : i32
    return %c0_i32, %c0_i32_0 : i32, i32
  }
  func.func @transform_7(%arg0: i32) -> (i32, i32) {
    %c0_i32 = arith.constant 0 : i32
    %c0_i32_0 = arith.constant 0 : i32
    return %arg0, %c0_i32 : i32, i32
  }
}

</mosaic_0001>

<bundles_post_ra>
// kernel: tpu_custom_call.1
= control target key start
LH: loop header
LB: loop body
LE: loop exit
PB: predicated region body
PF: predicated region fallthrough
CT: control target
= control target key end

     0   :  { %13 = vsyncpa [#allocation4], 0  ;;  %s405_s0 = inlined_call_operand.hbm [shape: f32[8,16], index: 0, kind: input, shape index: {}]   ;;  %s406_s1 = inlined_call_operand.hbm [shape: bf16[16,128], index: 1, kind: input, shape index: {}]   ;;  %s407_s2 = inlined_call_operand.vmem [shape: f32[1,128], index: 2, kind: input, shape index: {}]   ;;  %s408_s3 = inlined_call_operand.hbm [shape: bf16[128,128], index: 3, kind: input, shape index: {}]   ;;  %s409_s4 = inlined_call_operand.vmem [shape: f32[1,128], index: 4, kind: input, shape index: {}]   ;;  %s410_s5 = inlined_call_operand.vmem [shape: f32[1,128], index: 5, kind: input, shape index: {}]   ;;  %s411_s6 = inlined_call_operand.<no memory space> [shape: f32[1,1], index: 6, kind: input, shape index: {}]   ;;  %s412_s7 = inlined_call_operand.vmem [shape: f32[8,1], index: 7, kind: output, shape index: {}]  }
   0x1   :  { %14 = vsyncpa [#allocation6], 0  ;;  %s30_s26 = sshll.u32 %s406_s1, 4  ;;  %s336_s27 = smov [#allocation5]   ;;  %s31_s26 = int_to_ptr.hbm [resolvable:$true] %s30_s26 }
   0x2   :  { %s32_s28 = sshll.u32 %s336_s27, 4  ;;  %s20_s8 = sshll.u32 %s405_s0, 4  ;;  %s33_s28 = int_to_ptr.vmem [resolvable:$true] %s32_s28  ;;  %s21_s8 = int_to_ptr.hbm [resolvable:$true] %s20_s8 }
   0x3   :  { %s337_s9 = smov 64   ;;  %s338_s10 = smov 4  }
   0x4   :  { %38 = dma.hbm_to_vmem [thread:$0]  %s31_s26, 128, %s33_s28, [#allocation6], %s337_s9, %s337_s9, %s338_s10  }
   0x5   :  { %s339_s11 = smov [#allocation3]   ;;  %s45_s15 = sshll.u32 %s408_s3, 4  ;;  %s46_s15 = int_to_ptr.hbm [resolvable:$true] %s45_s15 }
   0x6   :  { %s22_s12 = sshll.u32 %s339_s11, 4  ;;  %s340_s1 = smov [#allocation7]   ;;  %s23_s12 = int_to_ptr.vmem [resolvable:$true] %s22_s12 }
   0x7   :  { %25 = dma.hbm_to_vmem [thread:$0]  %s21_s8, 128, %s23_s12, [#allocation4]  }
   0x8   :  { %s47_s16 = sshll.u32 %s340_s1, 4  ;;  %s48_s16 = int_to_ptr.vmem [resolvable:$true] %s47_s16 }
   0x9   :  { %53 = dma.hbm_to_vmem [thread:$0]  %s46_s15, 1024, %s48_s16, [#allocation6], %s337_s9, %s337_s9, %s338_s10  }
   0xa   :  { %332 = dma.done.wait [#allocation4], 128  }
   0xb   :  { %333 = vsyncadd [#allocation4], 4294967168 }
   0xc   :  { %334 = dma.done.wait [#allocation6], 1152  }
   0xd   :  { %335 = vsyncadd [#allocation6], 4294966144  ;;  %v243_v0 = vld [vmem:[#allocation5] sm:$0xff]  ;;  %v73_v1 = vld [vmem:[#allocation3] sm:$0xff]  ;;  %vm87_vm0 = vcmask 130048   ;;  %v196_v24 = vstv %s411_s6  ;;  %vm198_vm1 = vcmask 7168  }
   0xe   :  { %v251_v2 = vld [vmem:[#allocation7 + $0x38] sm:$0xff]  ;;  %v74_v3 = vpack.c.bf16 %v73_v1, %v73_v1  ;;  %98 = vmatpush.bf16.msra.mxu0 %v243_v0  ;;  %v250_v4 = vld [vmem:[#allocation7 + $0x30] sm:$0xff]  ;;  %v249_v5 = vld [vmem:[#allocation7 + $0x28] sm:$0xff] }
   0xf   :  { %174 = vmatpush.bf16.msra.mxu1 %v251_v2  ;;  %v248_v6 = vld [vmem:[#allocation7 + $0x20] sm:$0xff]  ;;  %v247_v7 = vld [vmem:[#allocation7 + $0x18] sm:$0xff]  ;;  %v246_v8 = vld [vmem:[#allocation7 + $0x10] sm:$0xff] }
  0x10   :  { %v245_v9 = vld [vmem:[#allocation7 + $0x8] sm:$0xff]  ;;  %v244_v10 = vld [vmem:[#allocation7] sm:$0xff]  ;;  %v257_v11 = vld [vmem:[%s407_s2] ss:$0 sm:$0xff] }
  0x11   :  { %210 = vmatmul.msk.bf16.vlgmr.msra.gmra.mxu0 %vm87_vm0, %v74_v3  ;;  %v258_v17 = vld [vmem:[%s409_s4] ss:$0 sm:$0xff] }
  0x12   :  { %v259_v20 = vld [vmem:[%s410_s5] ss:$0 sm:$0xff] }
  0x13   :  { %175 = vmatpush.bf16.msra.mxu1 %v250_v4 }
  0x17   :  { %176 = vmatpush.bf16.msra.mxu1 %v249_v5 }
  0x1b   :  { %177 = vmatpush.bf16.msra.mxu1 %v248_v6 }
  0x1f   :  { %178 = vmatpush.bf16.msra.mxu1 %v247_v7 }
  0x23   :  { %179 = vmatpush.bf16.msra.mxu1 %v246_v8 }
  0x27   :  { %180 = vmatpush.bf16.msra.mxu1 %v245_v9 }
  0x2b   :  { %181 = vmatpush.bf16.msra.mxu1 %v244_v10 }
  0x8e   :  { %v100_v12 = vpop.f32.mrf.mxu0 }
  0x8f   :  { %v101_v13 = vadd.f32 %v257_v11, %v100_v12 }
  0x91   :  { %v104_v14 = vmax.f32 %v101_v13, 0.0 }
  0x93   :  { %v105_v15 = vpack.c.bf16 %v104_v14, %v104_v14 }
  0x95   :  { %182 = vmatmul.bf16.vlgmr.msra.gmra.mxu1 %v105_v15 }
  0x96   :  { %v102_v16 = vpop.f32.mrf.mxu0 }
 0x112   :  { %v183_v18 = vpop.f32.mrf.mxu1 }
 0x113   :  { %v184_v19 = vadd.f32 %v258_v17, %v183_v18 }
 0x115   :  { %v187_v21 = vmax.f32 %v184_v19, 0.0 }
 0x117   :  { %v192_v22 = vmul.f32 %v259_v20, %v187_v21 }
 0x119   :  { %193 = vadd.xlane.f32.xlu0 %v192_v22 }
 0x11a   :  { %v185_v23 = vpop.f32.mrf.mxu1 }
 0x18c   :  { %v194_v25 = vpop.xlane.xlu0 %193 }
 0x18d   :  { %v197_v26 = vadd.f32 %v196_v24, %v194_v25 }
 0x18f   :  { %199 = vst.msk [vmem:[%s412_s7] sm:$0xff] %vm198_vm1, %v197_v26 }
 0x190   :  { %204 = vsyncpa [#allocation4], 1 }
 0x191   :  { %205 = vsyncpa [#allocation6], 1 }

// kernel: tpu_custom_call.1
= control target key start
LH: loop header
LB: loop body
LE: loop exit
PB: predicated region body
PF: predicated region fallthrough
CT: control target
= control target key end

     0   :  { %13 = vsyncpa [#allocation4], 0  ;;  %s405_s0 = inlined_call_operand.hbm [shape: f32[8,16], index: 0, kind: input, shape index: {}]   ;;  %s406_s1 = inlined_call_operand.hbm [shape: bf16[16,128], index: 1, kind: input, shape index: {}]   ;;  %s407_s2 = inlined_call_operand.vmem [shape: f32[1,128], index: 2, kind: input, shape index: {}]   ;;  %s408_s3 = inlined_call_operand.hbm [shape: bf16[128,128], index: 3, kind: input, shape index: {}]   ;;  %s409_s4 = inlined_call_operand.vmem [shape: f32[1,128], index: 4, kind: input, shape index: {}]   ;;  %s410_s5 = inlined_call_operand.vmem [shape: f32[1,128], index: 5, kind: input, shape index: {}]   ;;  %s411_s6 = inlined_call_operand.<no memory space> [shape: f32[1,1], index: 6, kind: input, shape index: {}]   ;;  %s412_s7 = inlined_call_operand.vmem [shape: f32[8,1], index: 7, kind: output, shape index: {}]  }
   0x1   :  { %14 = vsyncpa [#allocation6], 0  ;;  %s30_s26 = sshll.u32 %s406_s1, 4  ;;  %s336_s27 = smov [#allocation5]   ;;  %s31_s26 = int_to_ptr.hbm [resolvable:$true] %s30_s26 }
   0x2   :  { %s32_s28 = sshll.u32 %s336_s27, 4  ;;  %s20_s8 = sshll.u32 %s405_s0, 4  ;;  %s33_s28 = int_to_ptr.vmem [resolvable:$true] %s32_s28  ;;  %s21_s8 = int_to_ptr.hbm [resolvable:$true] %s20_s8 }
   0x3   :  { %s337_s9 = smov 64   ;;  %s338_s10 = smov 4  }
   0x4   :  { %38 = dma.hbm_to_vmem [thread:$0]  %s31_s26, 128, %s33_s28, [#allocation6], %s337_s9, %s337_s9, %s338_s10  }
   0x5   :  { %s339_s11 = smov [#allocation3]   ;;  %s45_s15 = sshll.u32 %s408_s3, 4  ;;  %s46_s15 = int_to_ptr.hbm [resolvable:$true] %s45_s15 }
   0x6   :  { %s22_s12 = sshll.u32 %s339_s11, 4  ;;  %s340_s1 = smov [#allocation7]   ;;  %s23_s12 = int_to_ptr.vmem [resolvable:$true] %s22_s12 }
   0x7   :  { %25 = dma.hbm_to_vmem [thread:$0]  %s21_s8, 128, %s23_s12, [#allocation4]  }
   0x8   :  { %s47_s16 = sshll.u32 %s340_s1, 4  ;;  %s48_s16 = int_to_ptr.vmem [resolvable:$true] %s47_s16 }
   0x9   :  { %53 = dma.hbm_to_vmem [thread:$0]  %s46_s15, 1024, %s48_s16, [#allocation6], %s337_s9, %s337_s9, %s338_s10  }
   0xa   :  { %332 = dma.done.wait [#allocation4], 128  }
   0xb   :  { %333 = vsyncadd [#allocation4], 4294967168 }
   0xc   :  { %334 = dma.done.wait [#allocation6], 1152  }
   0xd   :  { %335 = vsyncadd [#allocation6], 4294966144  ;;  %v243_v0 = vld [vmem:[#allocation5] sm:$0xff]  ;;  %v73_v1 = vld [vmem:[#allocation3] sm:$0xff]  ;;  %vm87_vm0 = vcmask 130048   ;;  %v196_v24 = vstv %s411_s6  ;;  %vm198_vm1 = vcmask 7168  }
   0xe   :  { %v251_v2 = vld [vmem:[#allocation7 + $0x38] sm:$0xff]  ;;  %v74_v3 = vpack.c.bf16 %v73_v1, %v73_v1  ;;  %98 = vmatpush.bf16.msra.mxu0 %v243_v0  ;;  %v250_v4 = vld [vmem:[#allocation7 + $0x30] sm:$0xff]  ;;  %v249_v5 = vld [vmem:[#allocation7 + $0x28] sm:$0xff] }
   0xf   :  { %174 = vmatpush.bf16.msra.mxu1 %v251_v2  ;;  %v248_v6 = vld [vmem:[#allocation7 + $0x20] sm:$0xff]  ;;  %v247_v7 = vld [vmem:[#allocation7 + $0x18] sm:$0xff]  ;;  %v246_v8 = vld [vmem:[#allocation7 + $0x10] sm:$0xff] }
  0x10   :  { %v245_v9 = vld [vmem:[#allocation7 + $0x8] sm:$0xff]  ;;  %v244_v10 = vld [vmem:[#allocation7] sm:$0xff]  ;;  %v257_v11 = vld [vmem:[%s407_s2] ss:$0 sm:$0xff] }
  0x11   :  { %210 = vmatmul.msk.bf16.vlgmr.msra.gmra.mxu0 %vm87_vm0, %v74_v3  ;;  %v258_v17 = vld [vmem:[%s409_s4] ss:$0 sm:$0xff] }
  0x12   :  { %v259_v20 = vld [vmem:[%s410_s5] ss:$0 sm:$0xff] }
  0x13   :  { %175 = vmatpush.bf16.msra.mxu1 %v250_v4 }
  0x17   :  { %176 = vmatpush.bf16.msra.mxu1 %v249_v5 }
  0x1b   :  { %177 = vmatpush.bf16.msra.mxu1 %v248_v6 }
  0x1f   :  { %178 = vmatpush.bf16.msra.mxu1 %v247_v7 }
  0x23   :  { %179 = vmatpush.bf16.msra.mxu1 %v246_v8 }
  0x27   :  { %180 = vmatpush.bf16.msra.mxu1 %v245_v9 }
  0x2b   :  { %181 = vmatpush.bf16.msra.mxu1 %v244_v10 }
  0x8e   :  { %v100_v12 = vpop.f32.mrf.mxu0 }
  0x8f   :  { %v101_v13 = vadd.f32 %v257_v11, %v100_v12 }
  0x91   :  { %v104_v14 = vmax.f32 %v101_v13, 0.0 }
  0x93   :  { %v105_v15 = vpack.c.bf16 %v104_v14, %v104_v14 }
  0x95   :  { %182 = vmatmul.bf16.vlgmr.msra.gmra.mxu1 %v105_v15 }
  0x96   :  { %v102_v16 = vpop.f32.mrf.mxu0 }
 0x112   :  { %v183_v18 = vpop.f32.mrf.mxu1 }
 0x113   :  { %v184_v19 = vadd.f32 %v258_v17, %v183_v18 }
 0x115   :  { %v187_v21 = vmax.f32 %v184_v19, 0.0 }
 0x117   :  { %v192_v22 = vmul.f32 %v259_v20, %v187_v21 }
 0x119   :  { %193 = vadd.xlane.f32.xlu0 %v192_v22 }
 0x11a   :  { %v185_v23 = vpop.f32.mrf.mxu1 }
 0x18c   :  { %v194_v25 = vpop.xlane.xlu0 %193 }
 0x18d   :  { %v197_v26 = vadd.f32 %v196_v24, %v194_v25 }
 0x18f   :  { %199 = vst.msk [vmem:[%s412_s7] sm:$0xff] %vm198_vm1, %v197_v26 }
 0x190   :  { %204 = vsyncpa [#allocation4], 1 }
 0x191   :  { %205 = vsyncpa [#allocation6], 1 }

</bundles_post_ra>
